<compile_context>
chip_gen: v6e
topology: v6e:2x2x1
jax: 0.10.0
libtpu: 0.0.40
codegen_flags: <defaults>
</compile_context>

<pallas_src>
import jax
import jax.numpy as jnp
from jax import lax
from jax.experimental import pallas as pl
from jax.experimental.pallas import tpu as pltpu


def _round_up(x: int, mult: int) -> int:
    return ((x + mult - 1) // mult) * mult


def _pick_tile(dim: int, max_tile: int, align: int):
    """Pick a tile for `dim`.  Returns (tile, padded_dim).

    Preference order:
      (a) the full dim when it fits in one tile  -> no padding, no alignment
          constraint (full-extent blocks are always legal);
      (b) an aligned divisor of dim that is at least half the max tile
          -> no padding, intensity stays high;
      (c) the aligned max tile with zero-padding as a last resort.
    """
    if dim <= max_tile:
        return dim, dim
    max_aligned = max(align, (max_tile // align) * align)
    t = max_aligned
    while t >= max(align, max_aligned // 2):
        if dim % t == 0:
            return t, dim
        t -= align
    return max_aligned, _round_up(dim, max_aligned)


def _lm_head_kernel_single(x_ref, w_ref, o_ref):
    # grid = (vocab_tiles, token_tiles); the whole K contraction in one step,
    # so no accumulator scratch / init / finalize is needed.
    # x_tile: (tm, tk), w_tile: (tn, tk) -> contract dim 1 of both (x @ w.T).
    o_ref[...] = lax.dot_general(
        x_ref[...],
        w_ref[...],
        dimension_numbers=(((1,), (1,)), ((), ())),
        preferred_element_type=jnp.float32,
    ).astype(o_ref.dtype)


def _lm_head_kernel_acc(x_ref, w_ref, o_ref, acc_ref):
    # grid = (vocab_tiles, token_tiles, k_tiles); reduction axis last.
    k = pl.program_id(2)
    partial = lax.dot_general(
        x_ref[...],
        w_ref[...],
        dimension_numbers=(((1,), (1,)), ((), ())),
        preferred_element_type=jnp.float32,
    )

    # Skip the explicit zero-init: first k-step writes the result directly.
    @pl.when(k == 0)
    def _():
        acc_ref[...] = partial

    @pl.when(k != 0)
    def _():
        acc_ref[...] += partial

    @pl.when(k == pl.num_programs(2) - 1)
    def _():
        o_ref[...] = acc_ref[...].astype(o_ref.dtype)


def lm_head(x, w, *, tm=512, tn=2048, tk=1024,
            compute_dtype=jnp.bfloat16, out_dtype=None):
    """x: (batch, seq, d_model), w: (vocab, d_model) -> (batch, seq, vocab).

    compute_dtype: dtype used for the streamed operands (default bf16; MXU
        accumulation is always f32).  Pass None to keep the input dtype.
    out_dtype: dtype of the returned logits (default: x.dtype).
    """
    b, s, d = x.shape
    v, d2 = w.shape
    assert d == d2, "d_model mismatch between activations and weight"
    out_dtype = x.dtype if out_dtype is None else out_dtype

    m = b * s
    x2 = x.reshape(m, d)

    # bf16 compute path: halves HBM bytes for the (V, D) weight stream and the
    # activation stream; f32 accumulation preserves the reduction precision.
    if compute_dtype is not None:
        if x2.dtype != compute_dtype:
            x2 = x2.astype(compute_dtype)
        if w.dtype != compute_dtype:
            w = w.astype(compute_dtype)

    comp_itemsize = jnp.dtype(x2.dtype).itemsize
    out_itemsize = jnp.dtype(out_dtype).itemsize
    # Minimum sublane multiple depends on dtype packing (f32: 8, bf16: 16,
    # int8/fp8: 32).  tm sits on the sublane axis of both the X block and the
    # output block, so honour the stricter of the two.
    sub_m = max(32 // comp_itemsize, 32 // out_itemsize)

    tm, m_p = _pick_tile(m, tm, sub_m)
    tn, v_p = _pick_tile(v, tn, 128)
    tk, d_p = _pick_tile(d, tk, 128)

    # Last-resort zero padding (K-padding with zeros is a mathematical no-op;
    # padded M rows / V cols are sliced off at the end).  Common LM-head shapes
    # never hit this path thanks to _pick_tile.
    if (m_p, d_p) != (m, d):
        x2 = jnp.pad(x2, ((0, m_p - m), (0, d_p - d)))
    if (v_p, d_p) != (v, d):
        w = jnp.pad(w, ((0, v_p - v), (0, d_p - d)))

    vocab_tiles = v_p // tn
    token_tiles = m_p // tm
    k_tiles = d_p // tk

    # VMEM budget: double-buffered X / W / out blocks plus the f32 accumulator
    # (only when a k-loop exists).  Capped at 56 MiB to stay under v7x's
    # 64 MiB/TC physical VMEM; v5e/v6e (128 MiB) can sweep larger tiles.
    vmem_needed = (
        2 * tm * tk * comp_itemsize
        + 2 * tn * tk * comp_itemsize
        + 2 * tm * tn * out_itemsize
        + (tm * tn * 4 if k_tiles > 1 else 0)
    )
    vmem_limit = int(min(max(2 * vmem_needed, 32 << 20), 56 << 20))

    cost = pl.CostEstimate(
        flops=2 * m_p * d_p * v_p,
        transcendentals=0,
        bytes_accessed=(
            m_p * d_p * comp_itemsize * vocab_tiles    # X streamed per vocab tile
            + v_p * d_p * comp_itemsize * token_tiles  # W streamed per token tile
            + m_p * v_p * out_itemsize                 # logits written once
        ),
    )

    if k_tiles == 1:
        kernel = _lm_head_kernel_single
        grid_spec = pltpu.PrefetchScalarGridSpec(
            num_scalar_prefetch=0,
            grid=(vocab_tiles, token_tiles),
            in_specs=[
                # X: (tm, tk) tile indexed by the token tile
                pl.BlockSpec((tm, tk), lambda j, i: (i, 0)),
                # W: (tn, tk) tile of the UNtransposed (vocab, d_model) weight
                pl.BlockSpec((tn, tk), lambda j, i: (j, 0)),
            ],
            out_specs=pl.BlockSpec((tm, tn), lambda j, i: (i, j)),
        )
        dim_sem = ("parallel", "parallel")
    else:
        kernel = _lm_head_kernel_acc
        grid_spec = pltpu.PrefetchScalarGridSpec(
            num_scalar_prefetch=0,
            grid=(vocab_tiles, token_tiles, k_tiles),
            in_specs=[
                pl.BlockSpec((tm, tk), lambda j, i, k: (i, k)),
                pl.BlockSpec((tn, tk), lambda j, i, k: (j, k)),
            ],
            out_specs=pl.BlockSpec((tm, tn), lambda j, i, k: (i, j)),
            scratch_shapes=[pltpu.VMEM((tm, tn), jnp.float32)],
        )
        dim_sem = ("parallel", "parallel", "arbitrary")

    out = pl.pallas_call(
        kernel,
        out_shape=jax.ShapeDtypeStruct((m_p, v_p), out_dtype),
        grid_spec=grid_spec,
        compiler_params=pltpu.CompilerParams(
            dimension_semantics=dim_sem,
            vmem_limit_bytes=vmem_limit,
        ),
        cost_estimate=cost,
    )(x2, w)

    if (m_p, v_p) != (m, v):
        out = out[:m, :v]
    return out.reshape(b, s, v)


if __name__ == "__main__":
    # Small config consistent with the module: d_model=32, vocab_size=128.
    batch, seq, d_model, vocab_size = 2, 8, 32, 128

    key = jax.random.PRNGKey(0)
    kx, kw = jax.random.split(key)
    x = jax.random.normal(kx, (batch, seq, d_model), dtype=jnp.float32)
    # Deterministic stand-in for nn.Linear(d_model, vocab_size, bias=False).weight
    w = jax.random.normal(kw, (vocab_size, d_model), dtype=jnp.float32) * 0.02

    # Default (bf16-compute) path and exact f32 path.
    y_bf16 = lm_head(x, w)
    y_f32 = lm_head(x, w, compute_dtype=None)
    jax.block_until_ready((y_bf16, y_f32))

    # Reference: y = x @ W.T
    y_ref = jnp.einsum("bsd,vd->bsv", x, w)
    assert y_bf16.shape == (batch, seq, vocab_size)
    assert y_bf16.dtype == x.dtype
    assert jnp.allclose(y_f32, y_ref, atol=1e-4, rtol=1e-4)
    assert jnp.allclose(y_bf16, y_ref, atol=5e-2, rtol=5e-2)

    # Exercise the k-accumulation path (d_model > tk) on a small problem.
    d2, v2 = 256, 256
    kx2, kw2 = jax.random.split(jax.random.PRNGKey(1))
    x2 = jax.random.normal(kx2, (batch, seq, d2), dtype=jnp.float32)
    w2 = jax.random.normal(kw2, (v2, d2), dtype=jnp.float32) * 0.02
    y2 = jax.block_until_ready(lm_head(x2, w2, tk=128))
    y2_ref = jnp.einsum("bsd,vd->bsv", x2, w2)
    assert jnp.allclose(y2, y2_ref, atol=5e-2, rtol=5e-2)

    print("KERNEL_OK")
</pallas_src>

<mosaic_0001>
module attributes {stable_mosaic.version = 11 : i64} {
  func.func @_lm_head_kernel_single(%arg0: i32, %arg1: i32, %arg2: memref<16x32xbf16, #tpu.memory_space<vmem>>, %arg3: memref<128x32xbf16, #tpu.memory_space<vmem>>, %arg4: memref<16x128xf32, #tpu.memory_space<vmem>>) attributes {dimension_semantics = [#tpu.dimension_semantics<parallel>, #tpu.dimension_semantics<parallel>], iteration_bounds = array<i64: 1, 1>, scalar_prefetch = 0 : i64, scratch_operands = 0 : i64, tpu.core_type = #tpu.core_type<tc>, window_params = [{transform_indices = @transform_0, window_bounds = array<i64: 16, 32>}, {transform_indices = @transform_1, window_bounds = array<i64: 128, 32>}, {transform_indices = @transform_2, window_bounds = array<i64: 16, 128>}]} {
    %c0 = arith.constant 0 : index
    %c0_0 = arith.constant 0 : index
    %0 = vector.load %arg2[%c0, %c0_0] : memref<16x32xbf16, #tpu.memory_space<vmem>>, vector<16x32xbf16>
    %c0_1 = arith.constant 0 : index
    %c0_2 = arith.constant 0 : index
    %1 = vector.load %arg3[%c0_1, %c0_2] : memref<128x32xbf16, #tpu.memory_space<vmem>>, vector<128x32xbf16>
    %cst = arith.constant dense<0.000000e+00> : vector<16x128xf32>
    %2 = tpu.matmul %0, %1, %cst {dimension_numbers = #tpu.dot_dimension_numbers<[1], [1], [0], [0], [0, 0, 1, 0], [], []>} : vector<16x32xbf16>, vector<128x32xbf16>, vector<16x128xf32> -> vector<16x128xf32>
    %c0_3 = arith.constant 0 : index
    %c0_4 = arith.constant 0 : index
    %3 = vector.load %arg4[%c0_3, %c0_4] : memref<16x128xf32, #tpu.memory_space<vmem>>, vector<16x128xf32>
    tpu.vector_store %arg4[%c0_3, %c0_4], %2 {strides = array<i32>} : memref<16x128xf32, #tpu.memory_space<vmem>>, vector<16x128xf32>,
    return
  }
  func.func @transform_0(%arg0: i32, %arg1: i32) -> (i32, i32) {
    %c0_i32 = arith.constant 0 : i32
    %c0_i32_0 = arith.constant 0 : i32
    return %arg1, %c0_i32 : i32, i32
  }
  func.func @transform_1(%arg0: i32, %arg1: i32) -> (i32, i32) {
    %c0_i32 = arith.constant 0 : i32
    %c0_i32_0 = arith.constant 0 : i32
    return %arg0, %c0_i32 : i32, i32
  }
  func.func @transform_2(%arg0: i32, %arg1: i32) -> (i32, i32) {
    %c0_i32 = arith.constant 0 : i32
    return %arg1, %arg0 : i32, i32
  }
}

</mosaic_0001>

<bundles_post_ra>
// kernel: tpu_custom_call.1
= control target key start
LH: loop header
LB: loop body
LE: loop exit
PB: predicated region body
PF: predicated region fallthrough
CT: control target
= control target key end

     0   :  { %v238_v1 = vmov 0.0   ;;  %vm76_vm0 = vcmask 261120   ;;  %vm239_vm1 = vmmov 0   ;;  %s297_s0 = inlined_call_operand.vmem [shape: bf16[16,32], index: 0, kind: input, shape index: {}]   ;;  %s298_s1 = inlined_call_operand.vmem [shape: bf16[128,32], index: 1, kind: input, shape index: {}]   ;;  %s299_s2 = inlined_call_operand.hbm [shape: f32[16,128], index: 2, kind: output, shape index: {}]  }
   0x1   :  { %v207_v0 = vld [vmem:[%s298_s1 + $0x38] sm:$0xff]   ;;  %182 = vmatprep.subr.bf16.mxu0 %v238_v1  ;;  %v208_v3 = vld [vmem:[%s298_s1 + $0x30] sm:$0xff]   ;;  %198 = vmatprep.mubr.msk.bf16.mxu0 %vm239_vm1, %v238_v1 }
   0x2   :  { %v102_v2 = vsel %vm76_vm0, %v207_v0, 0  ;;  %v99_v4 = vsel %vm76_vm0, %v208_v3, 0 }
   0x3   :  { %183 = vmatpush3.bf16.xpose.msra.mxu0 %v102_v2 }
   0x4   :  { %184 = vmatprep.subr.bf16.mxu0 %v238_v1 }
   0x5   :  { %7 = vsyncpa [#allocation3], 0  ;;  %v209_v5 = vld [vmem:[%s298_s1 + $0x28] sm:$0xff]   ;;  %v210_v7 = vld [vmem:[%s298_s1 + $0x20] sm:$0xff]   ;;  %s240_s27 = smov [#allocation2]  }
   0x6   :  { %v96_v6 = vsel %vm76_vm0, %v209_v5, 0  ;;  %v93_v8 = vsel %vm76_vm0, %v210_v7, 0  ;;  %v211_v9 = vld [vmem:[%s298_s1 + $0x18] sm:$0xff]   ;;  %v212_v11 = vld [vmem:[%s298_s1 + $0x10] sm:$0xff]   ;;  %v213_v13 = vld [vmem:[%s298_s1 + $0x8] sm:$0xff]   ;;  %s152_s28 = sshll.u32 %s240_s27, 4  ;;  %s153_s28 = int_to_ptr.vmem [resolvable:$true] %s152_s28 }
   0x7   :  { %v90_v10 = vsel %vm76_vm0, %v211_v9, 0  ;;  %v87_v12 = vsel %vm76_vm0, %v212_v11, 0  ;;  %v84_v14 = vsel %vm76_vm0, %v213_v13, 0  ;;  %v214_v15 = vld [vmem:[%s298_s1] sm:$0xff]   ;;  %s216_s29 = scalar_lea.vmem %s153_s28, 256  ;;  %p221_p1 = scmp.lt.s32.totalorder %s153_s28, %s153_s28 }
   0x8   :  { %v81_v16 = vsel %vm76_vm0, %v214_v15, 0  ;;  %v215_v17 = vld [vmem:[%s297_s0] sm:$0xff]   ;;  %p217_p0 = scmp.ne.s32.totalorder %s153_s28, %s216_s29  ;;  %p222_p2 = scmp.lt.s32.totalorder %s216_s29, %s216_s29 }
   0xa   :  { %p223_p3 = por %p222_p2, %p221_p1 }
   0xb   :  { %185 = vmatpush3.bf16.xpose.msra.mxu0 %v99_v4 }
   0xc   :  { %186 = vmatprep.subr.bf16.mxu0 %v238_v1  ;;  %p224_p4 = pnand %p223_p3, %p217_p0 }
  0x13   :  { %187 = vmatpush3.bf16.xpose.msra.mxu0 %v96_v6 }
  0x14   :  { %188 = vmatprep.subr.bf16.mxu0 %v238_v1 }
  0x1b   :  { %189 = vmatpush3.bf16.xpose.msra.mxu0 %v93_v8 }
  0x1c   :  { %190 = vmatprep.subr.bf16.mxu0 %v238_v1 }
  0x23   :  { %191 = vmatpush3.bf16.xpose.msra.mxu0 %v90_v10 }
  0x24   :  { %192 = vmatprep.subr.bf16.mxu0 %v238_v1 }
  0x2b   :  { %193 = vmatpush3.bf16.xpose.msra.mxu0 %v87_v12 }
  0x2c   :  { %194 = vmatprep.subr.bf16.mxu0 %v238_v1 }
  0x33   :  { %195 = vmatpush3.bf16.xpose.msra.mxu0 %v84_v14 }
  0x34   :  { %196 = vmatprep.subr.bf16.mxu0 %v238_v1 }
  0x3b   :  { %197 = vmatpush3.bf16.xpose.msra.mxu0 %v81_v16 }
  0x42   :  { %199 = vmatmul.mubr.msk.bf16.vlgmr.msra.gmra.mxu0 %vm76_vm0, %v215_v17 }
 0x102   :  { %v138_v18 = vpop.f32.mrf.mxu0 }
 0x103   :  { %145 = vst [vmem:[#allocation2] sm:$0xff] %v138_v18 }
 0x104   :  { %v200_v19 = vpop.f32.mrf.mxu0 }
 0x106   :  { %v141_v20 = vpop.f32.mrf.mxu0 }
 0x107   :  { %146 = vst [vmem:[#allocation2 + $0x8] sm:$0xff] %v141_v20 }
 0x108   :  { %v201_v21 = vpop.f32.mrf.mxu0 }
 0x109   :  { %227 = shalt.err (!%p224_p4)
}
 0x10a   :  { %s241_s1 = smov 128   ;;  %s242_s0 = smov 8  }
 0x10b   :  { %158 = dma.vmem_to_hbm [thread:$0]  %s153_s28, 256, %s299_s2, [#allocation3], %s241_s1, %s241_s1, %s242_s0  }
 0x10c   :  { %236 = dma.done.wait [#allocation3], 256  }
 0x10d   :  { %237 = vsyncadd [#allocation3], 4294967040 }
 0x10e   :  { %162 = vsyncpa [#allocation3], 1 }

</bundles_post_ra>
